<compile_context>
chip_gen: v7x
topology: tpu7x:2x2x1
jax: 0.10.0
libtpu: 0.0.40
codegen_flags: <defaults>
</compile_context>

<pallas_src>
import functools

import jax
import jax.numpy as jnp
from jax.experimental import pallas as pl
from jax.experimental.pallas import tpu as pltpu


# --------------------------------------------------------------------------- #
# Kernel
# --------------------------------------------------------------------------- #
def _mlp_kernel(num_layers, E, H, per_member, cdt, x_ref, *refs):
    """refs = (W0, b0, W1, b1, ..., W_{L-1}, b_{L-1}, out_ref).

    Layer 0 is always E per-member dots (x stays in (E, bb, D_in) layout, no
    host-side transpose). Later layers are either one block-diagonal MXU dot
    covering the whole ensemble (per_member=False, small H) or E per-member
    dots (per_member=True, H >= 128). Dots accumulate in f32; bias add and
    SiLU are f32 on the VPU/EUP.
    """
    out_ref = refs[-1]
    wb = refs[:-1]

    # ---- layer 0: member m's output occupies lane block [m*H, (m+1)*H) ------
    w0, b0 = wb[0], wb[1][...]                       # w0: (E, D_in, H); b0: (1, E*H)
    parts = []
    for m in range(E):
        xm = x_ref[m].astype(cdt)                    # (bb, D_in)
        parts.append(jnp.dot(xm, w0[m], preferred_element_type=jnp.float32))

    if not per_member:
        # Small per-member width: pack all members into one lane-dense
        # (bb, E*H) activation so every later layer is a single MXU dot.
        h = jnp.concatenate(parts, axis=-1) + b0
        h = h * jax.nn.sigmoid(h)                    # SiLU
        for li in range(1, num_layers - 1):
            w = wb[2 * li][...]                      # (E*H, E*H) block-diagonal
            b = wb[2 * li + 1][...]                  # (1, E*H)
            h = jnp.dot(h.astype(cdt), w, preferred_element_type=jnp.float32) + b
            h = h * jax.nn.sigmoid(h)
        w_hd = wb[2 * (num_layers - 1)][...]         # (E*H, E) block-diagonal head
        b_hd = wb[2 * (num_layers - 1) + 1][...]     # (1, E)
        out = jnp.dot(h.astype(cdt), w_hd, preferred_element_type=jnp.float32) + b_hd
    else:
        # Per-member path (H >= 128): keep activations separate per member to
        # avoid E^2 block-diag weights and MXU zero-padding.
        hs = []
        for m, p in enumerate(parts):
            hm = p + b0[:, m * H:(m + 1) * H]
            hs.append(hm * jax.nn.sigmoid(hm))
        for li in range(1, num_layers - 1):
            w = wb[2 * li]                           # (E, H, H) ref
            b = wb[2 * li + 1][...]                  # (1, E*H)
            new_hs = []
            for m in range(E):
                hm = jnp.dot(hs[m].astype(cdt), w[m],
                             preferred_element_type=jnp.float32)
                hm = hm + b[:, m * H:(m + 1) * H]
                new_hs.append(hm * jax.nn.sigmoid(hm))
            hs = new_hs
        # Head: VPU multiply + XLU lane-reduce per member (avoids N=1 matmuls).
        w_hd = wb[2 * (num_layers - 1)]              # (E, 1, H), transposed at pack
        b_hd = wb[2 * (num_layers - 1) + 1][...]     # (1, E)
        cols = []
        for m in range(E):
            whm = w_hd[m].astype(jnp.float32)        # (1, H)
            cols.append(jnp.sum(hs[m] * whm, axis=-1, keepdims=True))
        out = jnp.concatenate(cols, axis=-1) + b_hd

    # Single store of the whole (bb, E) tile == pred.squeeze(-1).t() tile.
    out_ref[...] = out.astype(out_ref.dtype)


# --------------------------------------------------------------------------- #
# One-time parameter packing (hoisted out of the per-call path)
# --------------------------------------------------------------------------- #
def _block_diag(w):
    """(E, d_in, d_out) -> block-diagonal (E*d_in, E*d_out)."""
    E, di, do = w.shape
    eye = jnp.eye(E, dtype=w.dtype)
    return jnp.einsum("eio,ef->eifo", w, eye).reshape(E * di, E * do)


def pack_params(weights, biases, *, param_dtype=jnp.bfloat16, per_member=None):
    """Pack module parameters once (call at parameter-update time, NOT per forward).

    weights[i]: (E, d_in_i, d_out_i); biases[i]: (E, 1, d_out_i).
    """
    E, D_in, H = weights[0].shape
    num_layers = len(weights)
    assert len(biases) == num_layers
    assert weights[-1].shape[-1] == 1, "critic head must have dim_output == 1"
    if per_member is None:
        # Block-diag only while per-member width is sub-128 (review guidance).
        per_member = (H >= 128 and H % 128 == 0)

    pw, pb = [], []
    # Layer 0: always per-member (E, D_in, H) -- no block-diag zeros, no x transpose.
    pw.append(jnp.asarray(weights[0]).astype(param_dtype))
    pb.append(jnp.asarray(biases[0], jnp.float32).reshape(1, E * H))
    # Hidden layers.
    for li in range(1, num_layers - 1):
        w = jnp.asarray(weights[li])
        pw.append(w.astype(param_dtype) if per_member
                  else _block_diag(w).astype(param_dtype))
        pb.append(jnp.asarray(biases[li], jnp.float32).reshape(1, E * H))
    # Head.
    w_hd = jnp.asarray(weights[-1])
    if per_member:
        pw.append(jnp.transpose(w_hd, (0, 2, 1)).astype(param_dtype))  # (E, 1, H)
    else:
        pw.append(_block_diag(w_hd).astype(param_dtype))               # (E*H, E)
    pb.append(jnp.asarray(biases[-1], jnp.float32).reshape(1, E))

    return {
        "per_member": bool(per_member),
        "E": int(E), "H": int(H), "D_in": int(D_in),
        "num_layers": int(num_layers),
        "param_dtype": param_dtype,
        "weights": pw, "biases": pb,
    }


# --------------------------------------------------------------------------- #
# Forward wrapper
# --------------------------------------------------------------------------- #
def _pick_block_b(B):
    """Largest multiple-of-8 divisor of B that is <= 1024 and leaves >= 2 grid
    steps (pipelining + v7x two-TensorCore sharding); B itself when small."""
    if B <= 8 or B % 8 != 0:
        return B
    limit = min(B // 2, 1024)
    best = None
    d = 8
    while d <= limit:
        if B % d == 0:
            best = d
        d += 8
    return best if best is not None else B


def _const_spec(arr, single_buffer):
    """Full-extent, constant-index BlockSpec: DMA'd once, resident across grid."""
    zeros = (0,) * arr.ndim
    if single_buffer:
        return pl.BlockSpec(arr.shape, lambda i: zeros, pipeline_mode=pl.Buffered(1))
    return pl.BlockSpec(arr.shape, lambda i: zeros)


def _forward_impl(xu, packed, block_b, single_buffer_weights):
    E, B, D_in = xu.shape
    H = packed["H"]
    grid = (B // block_b,)

    in_specs = [pl.BlockSpec((E, block_b, D_in), lambda i: (0, i, 0))]
    operands = [xu]
    for w, b in zip(packed["weights"], packed["biases"]):
        in_specs.append(_const_spec(w, single_buffer_weights))
        in_specs.append(_const_spec(b, single_buffer_weights))
        operands.append(w)
        operands.append(b)
    out_spec = pl.BlockSpec((block_b, E), lambda i: (i, 0))

    # Rough VMEM footprint; only raise the scoped limit when we would exceed
    # the 32 MiB default (matters at production H/E, not at these test sizes).
    def _nbytes(a):
        return int(a.size) * a.dtype.itemsize
    wb_bytes = (sum(_nbytes(a) for a in packed["weights"])
                + sum(_nbytes(a) for a in packed["biases"]))
    tile_bytes = E * block_b * D_in * xu.dtype.itemsize + block_b * E * 4
    est = (1 if single_buffer_weights else 2) * wb_bytes + 2 * tile_bytes + (2 << 20)
    cp_kwargs = {"dimension_semantics": ("parallel",)}   # batch axis only
    if est > (32 << 20):
        cp_kwargs["vmem_limit_bytes"] = int(min(est, 128 << 20))

    kernel = functools.partial(_mlp_kernel, packed["num_layers"], E, H,
                               packed["per_member"], packed["param_dtype"])
    return pl.pallas_call(
        kernel,
        out_shape=jax.ShapeDtypeStruct((B, E), jnp.float32),
        grid_spec=pltpu.PrefetchScalarGridSpec(
            num_scalar_prefetch=0,
            grid=grid,
            in_specs=in_specs,
            out_specs=out_spec,
        ),
        compiler_params=pltpu.CompilerParams(**cp_kwargs),
    )(*operands)


_SINGLE_BUFFER_OK = True  # flipped off if this JAX build rejects pl.Buffered(1)


def ensemble_critic_forward(xu, packed, *, block_b=None,
                            dropout_rate=0.0, norm_eps=0.0):
    """xu: (E, B, D_in); packed: output of pack_params. Returns (B, E) f32."""
    global _SINGLE_BUFFER_OK
    if dropout_rate != 0.0 or norm_eps != 0.0:
        # TODO(synk): dropout / layer-norm branches of NormalizedEnsembleLinear.
        raise NotImplementedError(
            "dropout_rate > 0 / norm_eps > 0 are not implemented in this kernel")
    E, B, D_in = xu.shape
    assert E == packed["E"] and D_in == packed["D_in"], "xu does not match params"

    if (block_b is None or block_b <= 0 or B % block_b != 0
            or (block_b % 8 != 0 and block_b != B)):
        block_b = _pick_block_b(B)

    if _SINGLE_BUFFER_OK:
        try:
            return _forward_impl(xu, packed, block_b, single_buffer_weights=True)
        except Exception:
            _SINGLE_BUFFER_OK = False  # fall back to default double buffering
    return _forward_impl(xu, packed, block_b, single_buffer_weights=False)


# --------------------------------------------------------------------------- #
# Reference + init (host side, for validation)
# --------------------------------------------------------------------------- #
def _reference_forward(xu, weights, biases):
    h = xu.astype(jnp.float32)
    for li, (w, b) in enumerate(zip(weights, biases)):
        h = jnp.einsum("ebi,eio->ebo", h, w.astype(jnp.float32)) + b
        if li < len(weights) - 1:
            h = h * jax.nn.sigmoid(h)
    return jnp.squeeze(h, -1).T


def init_params(key, dim_obs, dim_act, dim_hidden, num_hidden, num_members,
                dim_output=1, zero_head=True):
    """Deterministic init; zero_head=True matches the module __init__."""
    dims = [dim_obs + dim_act] + [dim_hidden] * num_hidden + [dim_output]
    weights, biases = [], []
    for i in range(len(dims) - 1):
        d_in, d_out = dims[i], dims[i + 1]
        key, kw, kb = jax.random.split(key, 3)
        if zero_head and i == len(dims) - 2:
            w = jnp.zeros((num_members, d_in, d_out), jnp.float32)
            b = jnp.zeros((num_members, 1, d_out), jnp.float32)
        else:
            scale = 1.0 / jnp.sqrt(jnp.float32(d_in))
            w = jax.random.uniform(kw, (num_members, d_in, d_out),
                                   jnp.float32, -scale, scale)
            b = jax.random.uniform(kb, (num_members, 1, d_out),
                                   jnp.float32, -scale, scale)
        weights.append(w)
        biases.append(b)
    return weights, biases


# --------------------------------------------------------------------------- #
# Self-test
# --------------------------------------------------------------------------- #
if __name__ == "__main__":
    key = jax.random.PRNGKey(0)

    # Config 1: small shapes (block-diagonal path; E*H = 128 lanes).
    dim_obs, dim_act, dim_hidden, num_hidden = 12, 4, 32, 2   # -> 3 linear layers
    E, B = 4, 8
    key, kx = jax.random.split(key)
    xu = jax.random.normal(kx, (E, B, dim_obs + dim_act), jnp.float32)

    # (1) Module-faithful init (zero-filled head), f32 packing, exact check.
    w1, b1 = init_params(key, dim_obs, dim_act, dim_hidden, num_hidden, E)
    packed1 = pack_params(w1, b1, param_dtype=jnp.float32)
    out1 = jax.block_until_ready(ensemble_critic_forward(xu, packed1))
    ref1 = _reference_forward(xu, w1, b1)
    assert out1.shape == (B, E), out1.shape
    assert jnp.allclose(out1, ref1, atol=1e-5, rtol=1e-5), "mismatch (zero head, f32)"

    # (2) Random head, f32 packing -> tight-tolerance validation of all math.
    w2, b2 = init_params(jax.random.PRNGKey(1), dim_obs, dim_act, dim_hidden,
                         num_hidden, E, zero_head=False)
    packed2 = pack_params(w2, b2, param_dtype=jnp.float32)
    out2 = jax.block_until_ready(ensemble_critic_forward(xu, packed2))
    ref2 = _reference_forward(xu, w2, b2)
    assert jnp.allclose(out2, ref2, atol=1e-5, rtol=1e-5), "mismatch (rand head, f32)"

    # (3) Random head, bf16 packed weights (MXU-native) -> loosened tolerance.
    packed3 = pack_params(w2, b2, param_dtype=jnp.bfloat16)
    out3 = jax.block_until_ready(ensemble_critic_forward(xu, packed3))
    assert jnp.allclose(out3, ref2, atol=5e-2, rtol=5e-2), "mismatch (rand head, bf16)"

    # Config 2: H = 128 -> per-member path; B = 16 -> 2 batch tiles in the grid.
    dim_hidden4, B4 = 128, 16
    k4x, k4p = jax.random.split(jax.random.PRNGKey(2))
    xu4 = jax.random.normal(k4x, (E, B4, dim_obs + dim_act), jnp.float32)
    w4, b4 = init_params(k4p, dim_obs, dim_act, dim_hidden4, num_hidden, E,
                         zero_head=False)
    packed4 = pack_params(w4, b4, param_dtype=jnp.bfloat16)
    assert packed4["per_member"], "expected per-member path for H=128"
    out4 = jax.block_until_ready(ensemble_critic_forward(xu4, packed4))
    ref4 = _reference_forward(xu4, w4, b4)
    assert out4.shape == (B4, E), out4.shape
    assert jnp.allclose(out4, ref4, atol=5e-2, rtol=5e-2), "mismatch (per-member, bf16)"

    print("KERNEL_OK")
</pallas_src>

<mosaic_0001>
module attributes {stable_mosaic.version = 11 : i64} {
  func.func @_mlp_kernel(%arg0: i32, %arg1: memref<4x8x16xf32, #tpu.memory_space<vmem>>, %arg2: memref<4x16x32xf32, #tpu.memory_space<vmem>>, %arg3: memref<1x128xf32, #tpu.memory_space<vmem>>, %arg4: memref<128x128xf32, #tpu.memory_space<vmem>>, %arg5: memref<1x128xf32, #tpu.memory_space<vmem>>, %arg6: memref<128x4xf32, #tpu.memory_space<vmem>>, %arg7: memref<1x4xf32, #tpu.memory_space<vmem>>, %arg8: memref<8x4xf32, #tpu.memory_space<vmem>>) attributes {dimension_semantics = [#tpu.dimension_semantics<parallel>], iteration_bounds = array<i64: 1>, scalar_prefetch = 0 : i64, scratch_operands = 0 : i64, tpu.core_type = #tpu.core_type<tc>, window_params = [{transform_indices = @transform_0, window_bounds = array<i64: 4, 8, 16>}, {pipeline_mode = #tpu.pipeline_mode<synchronous>, transform_indices = @transform_1, window_bounds = array<i64: 4, 16, 32>}, {pipeline_mode = #tpu.pipeline_mode<synchronous>, transform_indices = @transform_2, window_bounds = array<i64: 1, 128>}, {pipeline_mode = #tpu.pipeline_mode<synchronous>, transform_indices = @transform_3, window_bounds = array<i64: 128, 128>}, {pipeline_mode = #tpu.pipeline_mode<synchronous>, transform_indices = @transform_4, window_bounds = array<i64: 1, 128>}, {pipeline_mode = #tpu.pipeline_mode<synchronous>, transform_indices = @transform_5, window_bounds = array<i64: 128, 4>}, {pipeline_mode = #tpu.pipeline_mode<synchronous>, transform_indices = @transform_6, window_bounds = array<i64: 1, 4>}, {transform_indices = @transform_7, window_bounds = array<i64: 8, 4>}]} {
    %c0 = arith.constant 0 : index
    %c0_0 = arith.constant 0 : index
    %0 = vector.load %arg3[%c0, %c0_0] : memref<1x128xf32, #tpu.memory_space<vmem>>, vector<1x128xf32>
    %c0_1 = arith.constant 0 : index
    %c0_2 = arith.constant 0 : index
    %c0_3 = arith.constant 0 : index
    %1 = vector.load %arg1[%c0_1, %c0_2, %c0_3] : memref<4x8x16xf32, #tpu.memory_space<vmem>>, vector<1x8x16xf32>
    %2 = vector.shape_cast %1 : vector<1x8x16xf32> to vector<8x16xf32>
    %c0_4 = arith.constant 0 : index
    %c0_5 = arith.constant 0 : index
    %c0_6 = arith.constant 0 : index
    %3 = vector.load %arg2[%c0_4, %c0_5, %c0_6] : memref<4x16x32xf32, #tpu.memory_space<vmem>>, vector<1x16x32xf32>
    %4 = vector.shape_cast %3 : vector<1x16x32xf32> to vector<16x32xf32>
    %cst = arith.constant dense<0.000000e+00> : vector<8x32xf32>
    %5 = tpu.matmul %2, %4, %cst {dimension_numbers = #tpu.dot_dimension_numbers<[1], [0], [0], [1], [0, 0, 1, 1], [], []>} : vector<8x16xf32>, vector<16x32xf32>, vector<8x32xf32> -> vector<8x32xf32>
    %c1 = arith.constant 1 : index
    %c0_7 = arith.constant 0 : index
    %c0_8 = arith.constant 0 : index
    %6 = vector.load %arg1[%c1, %c0_7, %c0_8] : memref<4x8x16xf32, #tpu.memory_space<vmem>>, vector<1x8x16xf32>
    %7 = vector.shape_cast %6 : vector<1x8x16xf32> to vector<8x16xf32>
    %c1_9 = arith.constant 1 : index
    %c0_10 = arith.constant 0 : index
    %c0_11 = arith.constant 0 : index
    %8 = vector.load %arg2[%c1_9, %c0_10, %c0_11] : memref<4x16x32xf32, #tpu.memory_space<vmem>>, vector<1x16x32xf32>
    %9 = vector.shape_cast %8 : vector<1x16x32xf32> to vector<16x32xf32>
    %cst_12 = arith.constant dense<0.000000e+00> : vector<8x32xf32>
    %10 = tpu.matmul %7, %9, %cst_12 {dimension_numbers = #tpu.dot_dimension_numbers<[1], [0], [0], [1], [0, 0, 1, 1], [], []>} : vector<8x16xf32>, vector<16x32xf32>, vector<8x32xf32> -> vector<8x32xf32>
    %c2 = arith.constant 2 : index
    %c0_13 = arith.constant 0 : index
    %c0_14 = arith.constant 0 : index
    %11 = vector.load %arg1[%c2, %c0_13, %c0_14] : memref<4x8x16xf32, #tpu.memory_space<vmem>>, vector<1x8x16xf32>
    %12 = vector.shape_cast %11 : vector<1x8x16xf32> to vector<8x16xf32>
    %c2_15 = arith.constant 2 : index
    %c0_16 = arith.constant 0 : index
    %c0_17 = arith.constant 0 : index
    %13 = vector.load %arg2[%c2_15, %c0_16, %c0_17] : memref<4x16x32xf32, #tpu.memory_space<vmem>>, vector<1x16x32xf32>
    %14 = vector.shape_cast %13 : vector<1x16x32xf32> to vector<16x32xf32>
    %cst_18 = arith.constant dense<0.000000e+00> : vector<8x32xf32>
    %15 = tpu.matmul %12, %14, %cst_18 {dimension_numbers = #tpu.dot_dimension_numbers<[1], [0], [0], [1], [0, 0, 1, 1], [], []>} : vector<8x16xf32>, vector<16x32xf32>, vector<8x32xf32> -> vector<8x32xf32>
    %c3 = arith.constant 3 : index
    %c0_19 = arith.constant 0 : index
    %c0_20 = arith.constant 0 : index
    %16 = vector.load %arg1[%c3, %c0_19, %c0_20] : memref<4x8x16xf32, #tpu.memory_space<vmem>>, vector<1x8x16xf32>
    %17 = vector.shape_cast %16 : vector<1x8x16xf32> to vector<8x16xf32>
    %c3_21 = arith.constant 3 : index
    %c0_22 = arith.constant 0 : index
    %c0_23 = arith.constant 0 : index
    %18 = vector.load %arg2[%c3_21, %c0_22, %c0_23] : memref<4x16x32xf32, #tpu.memory_space<vmem>>, vector<1x16x32xf32>
    %19 = vector.shape_cast %18 : vector<1x16x32xf32> to vector<16x32xf32>
    %cst_24 = arith.constant dense<0.000000e+00> : vector<8x32xf32>
    %20 = tpu.matmul %17, %19, %cst_24 {dimension_numbers = #tpu.dot_dimension_numbers<[1], [0], [0], [1], [0, 0, 1, 1], [], []>} : vector<8x16xf32>, vector<16x32xf32>, vector<8x32xf32> -> vector<8x32xf32>
    %21 = tpu.concatenate %5, %10, %15, %20 in 1 : vector<8x32xf32>, vector<8x32xf32>, vector<8x32xf32>, vector<8x32xf32> -> vector<8x128xf32>
    %22 = vector.broadcast %0 : vector<1x128xf32> to vector<8x128xf32>
    %23 = arith.addf %21, %22 : vector<8x128xf32>
    %24 = arith.negf %23 : vector<8x128xf32>
    %25 = math.exp %24 : vector<8x128xf32>
    %cst_25 = arith.constant 1.000000e+00 : f32
    %26 = vector.broadcast %cst_25 : f32 to vector<8x128xf32>
    %27 = arith.addf %26, %25 : vector<8x128xf32>
    %28 = arith.divf %26, %27 : vector<8x128xf32>
    %29 = arith.mulf %23, %28 : vector<8x128xf32>
    %c0_26 = arith.constant 0 : index
    %c0_27 = arith.constant 0 : index
    %30 = vector.load %arg4[%c0_26, %c0_27] : memref<128x128xf32, #tpu.memory_space<vmem>>, vector<128x128xf32>
    %c0_28 = arith.constant 0 : index
    %c0_29 = arith.constant 0 : index
    %31 = vector.load %arg5[%c0_28, %c0_29] : memref<1x128xf32, #tpu.memory_space<vmem>>, vector<1x128xf32>
    %cst_30 = arith.constant dense<0.000000e+00> : vector<8x128xf32>
    %32 = tpu.matmul %29, %30, %cst_30 {dimension_numbers = #tpu.dot_dimension_numbers<[1], [0], [0], [1], [0, 0, 1, 1], [], []>} : vector<8x128xf32>, vector<128x128xf32>, vector<8x128xf32> -> vector<8x128xf32>
    %33 = vector.broadcast %31 : vector<1x128xf32> to vector<8x128xf32>
    %34 = arith.addf %32, %33 : vector<8x128xf32>
    %35 = arith.negf %34 : vector<8x128xf32>
    %36 = math.exp %35 : vector<8x128xf32>
    %cst_31 = arith.constant 1.000000e+00 : f32
    %37 = vector.broadcast %cst_31 : f32 to vector<8x128xf32>
    %38 = arith.addf %37, %36 : vector<8x128xf32>
    %39 = arith.divf %37, %38 : vector<8x128xf32>
    %40 = arith.mulf %34, %39 : vector<8x128xf32>
    %c0_32 = arith.constant 0 : index
    %c0_33 = arith.constant 0 : index
    %41 = vector.load %arg6[%c0_32, %c0_33] : memref<128x4xf32, #tpu.memory_space<vmem>>, vector<128x4xf32>
    %c0_34 = arith.constant 0 : index
    %c0_35 = arith.constant 0 : index
    %42 = vector.load %arg7[%c0_34, %c0_35] : memref<1x4xf32, #tpu.memory_space<vmem>>, vector<1x4xf32>
    %cst_36 = arith.constant dense<0.000000e+00> : vector<8x4xf32>
    %43 = tpu.matmul %40, %41, %cst_36 {dimension_numbers = #tpu.dot_dimension_numbers<[1], [0], [0], [1], [0, 0, 1, 1], [], []>} : vector<8x128xf32>, vector<128x4xf32>, vector<8x4xf32> -> vector<8x4xf32>
    %44 = vector.broadcast %42 : vector<1x4xf32> to vector<8x4xf32>
    %45 = arith.addf %43, %44 : vector<8x4xf32>
    %c0_37 = arith.constant 0 : index
    %c0_38 = arith.constant 0 : index
    %46 = vector.load %arg8[%c0_37, %c0_38] : memref<8x4xf32, #tpu.memory_space<vmem>>, vector<8x4xf32>
    tpu.vector_store %arg8[%c0_37, %c0_38], %45 {strides = array<i32>} : memref<8x4xf32, #tpu.memory_space<vmem>>, vector<8x4xf32>,
    return
  }
  func.func @transform_0(%arg0: i32) -> (i32, i32, i32) {
    %c0_i32 = arith.constant 0 : i32
    %c0_i32_0 = arith.constant 0 : i32
    %c0_i32_1 = arith.constant 0 : i32
    return %c0_i32, %arg0, %c0_i32_0 : i32, i32, i32
  }
  func.func @transform_1(%arg0: i32) -> (i32, i32, i32) {
    %c0_i32 = arith.constant 0 : i32
    %c0_i32_0 = arith.constant 0 : i32
    %c0_i32_1 = arith.constant 0 : i32
    %c0_i32_2 = arith.constant 0 : i32
    return %c0_i32, %c0_i32_0, %c0_i32_1 : i32, i32, i32
  }
  func.func @transform_2(%arg0: i32) -> (i32, i32) {
    %c0_i32 = arith.constant 0 : i32
    %c0_i32_0 = arith.constant 0 : i32
    %c0_i32_1 = arith.constant 0 : i32
    return %c0_i32, %c0_i32_0 : i32, i32
  }
  func.func @transform_3(%arg0: i32) -> (i32, i32) {
    %c0_i32 = arith.constant 0 : i32
    %c0_i32_0 = arith.constant 0 : i32
    %c0_i32_1 = arith.constant 0 : i32
    return %c0_i32, %c0_i32_0 : i32, i32
  }
  func.func @transform_4(%arg0: i32) -> (i32, i32) {
    %c0_i32 = arith.constant 0 : i32
    %c0_i32_0 = arith.constant 0 : i32
    %c0_i32_1 = arith.constant 0 : i32
    return %c0_i32, %c0_i32_0 : i32, i32
  }
  func.func @transform_5(%arg0: i32) -> (i32, i32) {
    %c0_i32 = arith.constant 0 : i32
    %c0_i32_0 = arith.constant 0 : i32
    %c0_i32_1 = arith.constant 0 : i32
    return %c0_i32, %c0_i32_0 : i32, i32
  }
  func.func @transform_6(%arg0: i32) -> (i32, i32) {
    %c0_i32 = arith.constant 0 : i32
    %c0_i32_0 = arith.constant 0 : i32
    %c0_i32_1 = arith.constant 0 : i32
    return %c0_i32, %c0_i32_0 : i32, i32
  }
  func.func @transform_7(%arg0: i32) -> (i32, i32) {
    %c0_i32 = arith.constant 0 : i32
    %c0_i32_0 = arith.constant 0 : i32
    return %arg0, %c0_i32 : i32, i32
  }
}

module attributes {stable_mosaic.version = 11 : i64} {
  func.func @_mlp_kernel(%arg0: i32, %arg1: memref<4x8x16xf32, #tpu.memory_space<vmem>>, %arg2: memref<4x16x32xf32, #tpu.memory_space<vmem>>, %arg3: memref<1x128xf32, #tpu.memory_space<vmem>>, %arg4: memref<128x128xf32, #tpu.memory_space<vmem>>, %arg5: memref<1x128xf32, #tpu.memory_space<vmem>>, %arg6: memref<128x4xf32, #tpu.memory_space<vmem>>, %arg7: memref<1x4xf32, #tpu.memory_space<vmem>>, %arg8: memref<8x4xf32, #tpu.memory_space<vmem>>) attributes {dimension_semantics = [#tpu.dimension_semantics<parallel>], iteration_bounds = array<i64: 1>, scalar_prefetch = 0 : i64, scratch_operands = 0 : i64, tpu.core_type = #tpu.core_type<tc>, window_params = [{transform_indices = @transform_0, window_bounds = array<i64: 4, 8, 16>}, {pipeline_mode = #tpu.pipeline_mode<synchronous>, transform_indices = @transform_1, window_bounds = array<i64: 4, 16, 32>}, {pipeline_mode = #tpu.pipeline_mode<synchronous>, transform_indices = @transform_2, window_bounds = array<i64: 1, 128>}, {pipeline_mode = #tpu.pipeline_mode<synchronous>, transform_indices = @transform_3, window_bounds = array<i64: 128, 128>}, {pipeline_mode = #tpu.pipeline_mode<synchronous>, transform_indices = @transform_4, window_bounds = array<i64: 1, 128>}, {pipeline_mode = #tpu.pipeline_mode<synchronous>, transform_indices = @transform_5, window_bounds = array<i64: 128, 4>}, {pipeline_mode = #tpu.pipeline_mode<synchronous>, transform_indices = @transform_6, window_bounds = array<i64: 1, 4>}, {transform_indices = @transform_7, window_bounds = array<i64: 8, 4>}]} {
    %c0 = arith.constant 0 : index
    %c0_0 = arith.constant 0 : index
    %0 = vector.load %arg3[%c0, %c0_0] : memref<1x128xf32, #tpu.memory_space<vmem>>, vector<1x128xf32>
    %c0_1 = arith.constant 0 : index
    %c0_2 = arith.constant 0 : index
    %c0_3 = arith.constant 0 : index
    %1 = vector.load %arg1[%c0_1, %c0_2, %c0_3] : memref<4x8x16xf32, #tpu.memory_space<vmem>>, vector<1x8x16xf32>
    %2 = vector.shape_cast %1 : vector<1x8x16xf32> to vector<8x16xf32>
    %c0_4 = arith.constant 0 : index
    %c0_5 = arith.constant 0 : index
    %c0_6 = arith.constant 0 : index
    %3 = vector.load %arg2[%c0_4, %c0_5, %c0_6] : memref<4x16x32xf32, #tpu.memory_space<vmem>>, vector<1x16x32xf32>
    %4 = vector.shape_cast %3 : vector<1x16x32xf32> to vector<16x32xf32>
    %cst = arith.constant dense<0.000000e+00> : vector<8x32xf32>
    %5 = tpu.matmul %2, %4, %cst {dimension_numbers = #tpu.dot_dimension_numbers<[1], [0], [0], [1], [0, 0, 1, 1], [], []>} : vector<8x16xf32>, vector<16x32xf32>, vector<8x32xf32> -> vector<8x32xf32>
    %c1 = arith.constant 1 : index
    %c0_7 = arith.constant 0 : index
    %c0_8 = arith.constant 0 : index
    %6 = vector.load %arg1[%c1, %c0_7, %c0_8] : memref<4x8x16xf32, #tpu.memory_space<vmem>>, vector<1x8x16xf32>
    %7 = vector.shape_cast %6 : vector<1x8x16xf32> to vector<8x16xf32>
    %c1_9 = arith.constant 1 : index
    %c0_10 = arith.constant 0 : index
    %c0_11 = arith.constant 0 : index
    %8 = vector.load %arg2[%c1_9, %c0_10, %c0_11] : memref<4x16x32xf32, #tpu.memory_space<vmem>>, vector<1x16x32xf32>
    %9 = vector.shape_cast %8 : vector<1x16x32xf32> to vector<16x32xf32>
    %cst_12 = arith.constant dense<0.000000e+00> : vector<8x32xf32>
    %10 = tpu.matmul %7, %9, %cst_12 {dimension_numbers = #tpu.dot_dimension_numbers<[1], [0], [0], [1], [0, 0, 1, 1], [], []>} : vector<8x16xf32>, vector<16x32xf32>, vector<8x32xf32> -> vector<8x32xf32>
    %c2 = arith.constant 2 : index
    %c0_13 = arith.constant 0 : index
    %c0_14 = arith.constant 0 : index
    %11 = vector.load %arg1[%c2, %c0_13, %c0_14] : memref<4x8x16xf32, #tpu.memory_space<vmem>>, vector<1x8x16xf32>
    %12 = vector.shape_cast %11 : vector<1x8x16xf32> to vector<8x16xf32>
    %c2_15 = arith.constant 2 : index
    %c0_16 = arith.constant 0 : index
    %c0_17 = arith.constant 0 : index
    %13 = vector.load %arg2[%c2_15, %c0_16, %c0_17] : memref<4x16x32xf32, #tpu.memory_space<vmem>>, vector<1x16x32xf32>
    %14 = vector.shape_cast %13 : vector<1x16x32xf32> to vector<16x32xf32>
    %cst_18 = arith.constant dense<0.000000e+00> : vector<8x32xf32>
    %15 = tpu.matmul %12, %14, %cst_18 {dimension_numbers = #tpu.dot_dimension_numbers<[1], [0], [0], [1], [0, 0, 1, 1], [], []>} : vector<8x16xf32>, vector<16x32xf32>, vector<8x32xf32> -> vector<8x32xf32>
    %c3 = arith.constant 3 : index
    %c0_19 = arith.constant 0 : index
    %c0_20 = arith.constant 0 : index
    %16 = vector.load %arg1[%c3, %c0_19, %c0_20] : memref<4x8x16xf32, #tpu.memory_space<vmem>>, vector<1x8x16xf32>
    %17 = vector.shape_cast %16 : vector<1x8x16xf32> to vector<8x16xf32>
    %c3_21 = arith.constant 3 : index
    %c0_22 = arith.constant 0 : index
    %c0_23 = arith.constant 0 : index
    %18 = vector.load %arg2[%c3_21, %c0_22, %c0_23] : memref<4x16x32xf32, #tpu.memory_space<vmem>>, vector<1x16x32xf32>
    %19 = vector.shape_cast %18 : vector<1x16x32xf32> to vector<16x32xf32>
    %cst_24 = arith.constant dense<0.000000e+00> : vector<8x32xf32>
    %20 = tpu.matmul %17, %19, %cst_24 {dimension_numbers = #tpu.dot_dimension_numbers<[1], [0], [0], [1], [0, 0, 1, 1], [], []>} : vector<8x16xf32>, vector<16x32xf32>, vector<8x32xf32> -> vector<8x32xf32>
    %21 = tpu.concatenate %5, %10, %15, %20 in 1 : vector<8x32xf32>, vector<8x32xf32>, vector<8x32xf32>, vector<8x32xf32> -> vector<8x128xf32>
    %22 = vector.broadcast %0 : vector<1x128xf32> to vector<8x128xf32>
    %23 = arith.addf %21, %22 : vector<8x128xf32>
    %24 = arith.negf %23 : vector<8x128xf32>
    %25 = math.exp %24 : vector<8x128xf32>
    %cst_25 = arith.constant 1.000000e+00 : f32
    %26 = vector.broadcast %cst_25 : f32 to vector<8x128xf32>
    %27 = arith.addf %26, %25 : vector<8x128xf32>
    %28 = arith.divf %26, %27 : vector<8x128xf32>
    %29 = arith.mulf %23, %28 : vector<8x128xf32>
    %c0_26 = arith.constant 0 : index
    %c0_27 = arith.constant 0 : index
    %30 = vector.load %arg4[%c0_26, %c0_27] : memref<128x128xf32, #tpu.memory_space<vmem>>, vector<128x128xf32>
    %c0_28 = arith.constant 0 : index
    %c0_29 = arith.constant 0 : index
    %31 = vector.load %arg5[%c0_28, %c0_29] : memref<1x128xf32, #tpu.memory_space<vmem>>, vector<1x128xf32>
    %cst_30 = arith.constant dense<0.000000e+00> : vector<8x128xf32>
    %32 = tpu.matmul %29, %30, %cst_30 {dimension_numbers = #tpu.dot_dimension_numbers<[1], [0], [0], [1], [0, 0, 1, 1], [], []>} : vector<8x128xf32>, vector<128x128xf32>, vector<8x128xf32> -> vector<8x128xf32>
    %33 = vector.broadcast %31 : vector<1x128xf32> to vector<8x128xf32>
    %34 = arith.addf %32, %33 : vector<8x128xf32>
    %35 = arith.negf %34 : vector<8x128xf32>
    %36 = math.exp %35 : vector<8x128xf32>
    %cst_31 = arith.constant 1.000000e+00 : f32
    %37 = vector.broadcast %cst_31 : f32 to vector<8x128xf32>
    %38 = arith.addf %37, %36 : vector<8x128xf32>
    %39 = arith.divf %37, %38 : vector<8x128xf32>
    %40 = arith.mulf %34, %39 : vector<8x128xf32>
    %c0_32 = arith.constant 0 : index
    %c0_33 = arith.constant 0 : index
    %41 = vector.load %arg6[%c0_32, %c0_33] : memref<128x4xf32, #tpu.memory_space<vmem>>, vector<128x4xf32>
    %c0_34 = arith.constant 0 : index
    %c0_35 = arith.constant 0 : index
    %42 = vector.load %arg7[%c0_34, %c0_35] : memref<1x4xf32, #tpu.memory_space<vmem>>, vector<1x4xf32>
    %cst_36 = arith.constant dense<0.000000e+00> : vector<8x4xf32>
    %43 = tpu.matmul %40, %41, %cst_36 {dimension_numbers = #tpu.dot_dimension_numbers<[1], [0], [0], [1], [0, 0, 1, 1], [], []>} : vector<8x128xf32>, vector<128x4xf32>, vector<8x4xf32> -> vector<8x4xf32>
    %44 = vector.broadcast %42 : vector<1x4xf32> to vector<8x4xf32>
    %45 = arith.addf %43, %44 : vector<8x4xf32>
    %c0_37 = arith.constant 0 : index
    %c0_38 = arith.constant 0 : index
    %46 = vector.load %arg8[%c0_37, %c0_38] : memref<8x4xf32, #tpu.memory_space<vmem>>, vector<8x4xf32>
    tpu.vector_store %arg8[%c0_37, %c0_38], %45 {strides = array<i32>} : memref<8x4xf32, #tpu.memory_space<vmem>>, vector<8x4xf32>,
    return
  }
  func.func @transform_0(%arg0: i32) -> (i32, i32, i32) {
    %c0_i32 = arith.constant 0 : i32
    %c0_i32_0 = arith.constant 0 : i32
    %c0_i32_1 = arith.constant 0 : i32
    return %c0_i32, %arg0, %c0_i32_0 : i32, i32, i32
  }
  func.func @transform_1(%arg0: i32) -> (i32, i32, i32) {
    %c0_i32 = arith.constant 0 : i32
    %c0_i32_0 = arith.constant 0 : i32
    %c0_i32_1 = arith.constant 0 : i32
    %c0_i32_2 = arith.constant 0 : i32
    return %c0_i32, %c0_i32_0, %c0_i32_1 : i32, i32, i32
  }
  func.func @transform_2(%arg0: i32) -> (i32, i32) {
    %c0_i32 = arith.constant 0 : i32
    %c0_i32_0 = arith.constant 0 : i32
    %c0_i32_1 = arith.constant 0 : i32
    return %c0_i32, %c0_i32_0 : i32, i32
  }
  func.func @transform_3(%arg0: i32) -> (i32, i32) {
    %c0_i32 = arith.constant 0 : i32
    %c0_i32_0 = arith.constant 0 : i32
    %c0_i32_1 = arith.constant 0 : i32
    return %c0_i32, %c0_i32_0 : i32, i32
  }
  func.func @transform_4(%arg0: i32) -> (i32, i32) {
    %c0_i32 = arith.constant 0 : i32
    %c0_i32_0 = arith.constant 0 : i32
    %c0_i32_1 = arith.constant 0 : i32
    return %c0_i32, %c0_i32_0 : i32, i32
  }
  func.func @transform_5(%arg0: i32) -> (i32, i32) {
    %c0_i32 = arith.constant 0 : i32
    %c0_i32_0 = arith.constant 0 : i32
    %c0_i32_1 = arith.constant 0 : i32
    return %c0_i32, %c0_i32_0 : i32, i32
  }
  func.func @transform_6(%arg0: i32) -> (i32, i32) {
    %c0_i32 = arith.constant 0 : i32
    %c0_i32_0 = arith.constant 0 : i32
    %c0_i32_1 = arith.constant 0 : i32
    return %c0_i32, %c0_i32_0 : i32, i32
  }
  func.func @transform_7(%arg0: i32) -> (i32, i32) {
    %c0_i32 = arith.constant 0 : i32
    %c0_i32_0 = arith.constant 0 : i32
    return %arg0, %c0_i32 : i32, i32
  }
}

</mosaic_0001>

<bundles_post_ra>
// kernel: tpu_custom_call.1
= control target key start
LH: loop header
LB: loop body
LE: loop exit
PB: predicated region body
PF: predicated region fallthrough
CT: control target
= control target key end

     0   :  { %12 = vsyncpa [#allocation3], 0  ;;  %s1090_s0 = inlined_call_operand.hbm [shape: f32[4,8,16], index: 0, kind: input, shape index: {}]   ;;  %s1091_s1 = inlined_call_operand.hbm [shape: f32[4,16,32], index: 1, kind: input, shape index: {}]   ;;  %s1092_s2 = inlined_call_operand.vmem [shape: f32[1,128], index: 2, kind: input, shape index: {}]   ;;  %s1093_s3 = inlined_call_operand.vmem [shape: f32[128,128], index: 3, kind: input, shape index: {}]   ;;  %s1094_s4 = inlined_call_operand.vmem [shape: f32[1,128], index: 4, kind: input, shape index: {}]   ;;  %s1095_s5 = inlined_call_operand.vmem [shape: f32[128,4], index: 5, kind: input, shape index: {}]   ;;  %s1096_s6 = inlined_call_operand.vmem [shape: f32[1,4], index: 6, kind: input, shape index: {}]   ;;  %s1097_s7 = inlined_call_operand.vmem [shape: f32[8,4], index: 7, kind: output, shape index: {}]  }
   0x1   :  { %13 = vsyncpa [#allocation5], 0  ;;  %s878_s24 = smov [#allocation2]   ;;  %s830_s28 = scalar_lea.hbm %s1090_s0, 512 }
   0x2   :  { %s19_s25 = sshll.u32 %s878_s24, 4  ;;  %p831_p0 = scmp.ne.s32.totalorder %s1090_s0, %s830_s28  ;;  %s20_s25 = int_to_ptr.vmem [resolvable:$true] %s19_s25 }
   0x3   :  { %p834_p1 = scmp.lt.u32.totalorder %s830_s28, %s1090_s0 }
   0x5   :  { %p836_p2 = pnand %p834_p1, %p831_p0 }
   0x7   :  { %839 = shalt.err (!%p836_p2)
}
   0x8   :  { %s840_s10 = scalar_lea.vmem %s20_s25, 512  ;;  %p845_p4 = scmp.lt.s32.totalorder %s20_s25, %s20_s25 }
   0x9   :  { %p841_p3 = scmp.ne.s32.totalorder %s20_s25, %s840_s10  ;;  %p846_p5 = scmp.lt.s32.totalorder %s840_s10, %s840_s10 }
   0xb   :  { %p847_p6 = por %p846_p5, %p845_p4 }
   0xd   :  { %p848_p7 = pnand %p847_p6, %p841_p3 }
   0xf   :  { %851 = shalt.err (!%p848_p7)
}
  0x10   :  { %s879_s11 = smov 128   ;;  %s880_s12 = smov 8  }
  0x11   :  { %25 = dma.hbm_to_vmem [thread:$0]  %s1090_s0, 512, %s20_s25, [#allocation3], %s879_s11, %s879_s11, %s880_s12  }
  0x12   :  { %s881_s15 = smov [#allocation4]   ;;  %s852_s19 = scalar_lea.hbm %s1091_s1, 1024 }
  0x13   :  { %s31_s16 = sshll.u32 %s881_s15, 4  ;;  %p853_p8 = scmp.ne.s32.totalorder %s1091_s1, %s852_s19  ;;  %s32_s16 = int_to_ptr.vmem [resolvable:$true] %s31_s16 }
  0x14   :  { %p856_p9 = scmp.lt.u32.totalorder %s852_s19, %s1091_s1 }
  0x16   :  { %p858_p10 = pnand %p856_p9, %p853_p8 }
  0x18   :  { %861 = shalt.err (!%p858_p10)
}
  0x19   :  { %s862_s24 = scalar_lea.vmem %s32_s16, 1024  ;;  %p867_p12 = scmp.lt.s32.totalorder %s32_s16, %s32_s16 }
  0x1a   :  { %p863_p11 = scmp.ne.s32.totalorder %s32_s16, %s862_s24  ;;  %p868_p13 = scmp.lt.s32.totalorder %s862_s24, %s862_s24 }
  0x1c   :  { %p869_p0 = por %p868_p13, %p867_p12 }
  0x1e   :  { %p870_p1 = pnand %p869_p0, %p863_p11 }
  0x20   :  { %873 = shalt.err (!%p870_p1)
}
  0x21   :  { %37 = dma.hbm_to_vmem [thread:$0]  %s1091_s1, 1024, %s32_s16, [#allocation5], %s879_s11, %s879_s11, %s880_s12  }
  0x22   :  { %874 = dma.done.wait [#allocation3], 512  }
  0x23   :  { %875 = vsyncadd [#allocation3], 4294966784 }
  0x24   :  { %876 = dma.done.wait [#allocation5], 1024  }
  0x25   :  { %877 = vsyncadd [#allocation5], 4294966272  ;;  %v882_v0 = vmov 0.0|0.0   ;;  %vm883_vm0 = vmmov 0   ;;  %v884_v1 = vmov 0.0   ;;  %v56_v2 = vld [vmem:[#allocation4] sm:$0xff] }
  0x26   :  { %752 = vmatprep.subr.bf16.mxu0 %v882_v0  ;;  %755 = vmatprep.subr.bf16.mxu1 %v882_v0  ;;  %v57_v3 = vld [vmem:[#allocation4 + $0x8] sm:$0xff]  ;;  %v135_v4 = vld [vmem:[#allocation4 + $0x10] sm:$0xff]  ;;  %v136_v6 = vld [vmem:[#allocation4 + $0x18] sm:$0xff]  ;;  %vm58_vm1 = vcmask 130048   ;;  %s885_s14 = smov 32   ;;  %s886_s19 = smov 64  }
  0x27   :  { %658 = vmatprep.mubr.msk.f32.mxu0 %vm883_vm0, %v884_v1  ;;  %665 = vmatprep.mubr.msk.f32.mxu1 %vm883_vm0, %v884_v1  ;;  %v753_v5 = vpack.c.bf16 %v57_v3, %v56_v2  ;;  %v756_v7 = vpack.c.bf16 %v136_v6, %v135_v4  ;;  %v213_v8 = vld [vmem:[#allocation4 + $0x20] sm:$0xff]  ;;  %v214_v9 = vld [vmem:[#allocation4 + $0x28] sm:$0xff]  ;;  %v291_v10 = vld [vmem:[#allocation4 + $0x30] sm:$0xff]  ;;  %s887_s20 = smov 96   ;;  %vm378_vm2 = vcmask 261120   ;;  %vm380_vm3 = vcmask 523264  }
  0x28   :  { %v55_v11 = vld [vmem:[#allocation2] sm:$0xff]  ;;  %v759_v12 = vpack.c.bf16 %v214_v9, %v213_v8  ;;  %v292_v13 = vld [vmem:[#allocation4 + $0x38] sm:$0xff]  ;;  %v133_v14 = vld [vmem:[#allocation2 + $0x8] sm:$0xff]  ;;  %vm382_vm4 = vcmask 785408   ;;  %vm591_vm5 = vcmask 31744  }
  0x29   :  { %754 = vmatpush3.bf16.msra.mxu0 %v753_v5  ;;  %757 = vmatpush3.bf16.msra.mxu1 %v756_v7  ;;  %v762_v15 = vpack.c.bf16 %v292_v13, %v291_v10  ;;  %v211_v16 = vld [vmem:[#allocation2 + $0x10] sm:$0xff]  ;;  %v289_v17 = vld [vmem:[#allocation2 + $0x18] sm:$0xff]  ;;  %v398_v18 = vld [vmem:[%s1093_s3] sm:$0xff] }
  0x2a   :  { %758 = vmatprep.subr.bf16.mxu0 %v882_v0  ;;  %761 = vmatprep.subr.bf16.mxu1 %v882_v0  ;;  %v399_v19 = vld [vmem:[%s1093_s3 + $0x8] sm:$0xff]  ;;  %v400_v21 = vld [vmem:[%s1093_s3 + $0x10] sm:$0xff]  ;;  %v401_v22 = vld [vmem:[%s1093_s3 + $0x18] sm:$0xff] }
  0x2b   :  { %v765_v20 = vpack.c.bf16 %v399_v19, %v398_v18  ;;  %v768_v23 = vpack.c.bf16 %v401_v22, %v400_v21  ;;  %v402_v24 = vld [vmem:[%s1093_s3 + $0x20] sm:$0xff]  ;;  %v403_v25 = vld [vmem:[%s1093_s3 + $0x28] sm:$0xff]  ;;  %v404_v31 = vld [vmem:[%s1093_s3 + $0x30] sm:$0xff] }
  0x2c   :  { %659 = vmatmul.mubr.msk.f32.vlgmr.msra.gmra.mrb[0].mxu0 %vm58_vm1, %v55_v11  ;;  %666 = vmatmul.mubr.msk.f32.vlgmr.msra.gmra.mrb[0].mxu1 %vm58_vm1, %v133_v14  ;;  %v771_v27 = vpack.c.bf16 %v403_v25, %v402_v24  ;;  %v405_v32 = vld [vmem:[%s1093_s3 + $0x38] sm:$0xff]  ;;  %v406_v38 = vld [vmem:[%s1093_s3 + $0x40] sm:$0xff]  ;;  %v407_v39 = vld [vmem:[%s1093_s3 + $0x48] sm:$0xff] }
  0x2d   :  { %760 = vmatpush3.bf16.msra.mxu0 %v759_v12  ;;  %763 = vmatpush3.bf16.msra.mxu1 %v762_v15  ;;  %v774_v34 = vpack.c.bf16 %v405_v32, %v404_v31  ;;  %v777_v40 = vpack.c.bf16 %v407_v39, %v406_v38  ;;  %v408_v41 = vld [vmem:[%s1093_s3 + $0x50] sm:$0xff]  ;;  %v409_v42 = vld [vmem:[%s1093_s3 + $0x58] sm:$0xff]  ;;  %v410_v44 = vld [vmem:[%s1093_s3 + $0x60] sm:$0xff] }
  0x2e   :  { %672 = vmatprep.mubr.msk.f32.mxu0 %vm883_vm0, %v884_v1  ;;  %679 = vmatprep.mubr.msk.f32.mxu1 %vm883_vm0, %v884_v1  ;;  %v780_v43 = vpack.c.bf16 %v409_v42, %v408_v41  ;;  %v411_v45 = vld [vmem:[%s1093_s3 + $0x68] sm:$0xff]  ;;  %v412_v47 = vld [vmem:[%s1093_s3 + $0x70] sm:$0xff]  ;;  %v413_v48 = vld [vmem:[%s1093_s3 + $0x78] sm:$0xff] }
  0x2f   :  { %764 = vmatprep.subr.bf16.mxu0 %v882_v0  ;;  %788 = vmatprep.subr.bf16.mxu1 %v882_v0  ;;  %v783_v46 = vpack.c.bf16 %v411_v45, %v410_v44  ;;  %v786_v49 = vpack.c.bf16 %v413_v48, %v412_v47  ;;  %v603_v54 = vld [vmem:[%s1092_s2] ss:$0 sm:$0xff]  ;;  %v500_v3 = vld [vmem:[%s1095_s5 + $0x10] sm:$0xff]  ;;  %v501_v4 = vld [vmem:[%s1095_s5 + $0x18] sm:$0xff] }
  0x30   :  { %673 = vmatmul.mubr.msk.f32.vlgmr.msra.gmra.mrb[2].mxu0 %vm58_vm1, %v211_v16  ;;  %680 = vmatmul.mubr.msk.f32.vlgmr.msra.gmra.mrb[2].mxu1 %vm58_vm1, %v289_v17  ;;  %v498_v63 = vld [vmem:[%s1095_s5] sm:$0xff]  ;;  %v792_v5 = vpack.c.bf16 %v501_v4, %v500_v3  ;;  %v503_v7 = vld [vmem:[%s1095_s5 + $0x28] sm:$0xff]  ;;  %v504_v9 = vld [vmem:[%s1095_s5 + $0x30] sm:$0xff] }
  0x31   :  { %714 = vmatprep.mubr.msk.f32.mxu0 %vm883_vm0, %v884_v1  ;;  %749 = vmatprep.mubr.msk.f32.mxu1 %vm883_vm0, %v884_v1  ;;  %v499_v1 = vld [vmem:[%s1095_s5 + $0x8] sm:$0xff]  ;;  %v502_v6 = vld [vmem:[%s1095_s5 + $0x20] sm:$0xff]  ;;  %v505_v10 = vld [vmem:[%s1095_s5 + $0x38] sm:$0xff] }
  0x32   :  { %766 = vmatpush3.bf16.msra.mxu0 %v765_v20  ;;  %v789_v2 = vpack.c.bf16 %v499_v1, %v498_v63  ;;  %v795_v8 = vpack.c.bf16 %v503_v7, %v502_v6  ;;  %v798_v11 = vpack.c.bf16 %v505_v10, %v504_v9  ;;  %v506_v12 = vld [vmem:[%s1095_s5 + $0x40] sm:$0xff]  ;;  %v507_v13 = vld [vmem:[%s1095_s5 + $0x48] sm:$0xff]  ;;  %v508_v15 = vld [vmem:[%s1095_s5 + $0x50] sm:$0xff] }
  0x33   :  { %767 = vmatprep.subr.bf16.mxu0 %v882_v0  ;;  %v801_v14 = vpack.c.bf16 %v507_v13, %v506_v12  ;;  %v509_v16 = vld [vmem:[%s1095_s5 + $0x58] sm:$0xff]  ;;  %v510_v18 = vld [vmem:[%s1095_s5 + $0x60] sm:$0xff]  ;;  %v511_v19 = vld [vmem:[%s1095_s5 + $0x68] sm:$0xff] }
  0x34   :  { %790 = vmatpush3.bf16.msra.mxu1 %v789_v2  ;;  %v804_v17 = vpack.c.bf16 %v509_v16, %v508_v15  ;;  %v807_v20 = vpack.c.bf16 %v511_v19, %v510_v18  ;;  %v512_v21 = vld [vmem:[%s1095_s5 + $0x70] sm:$0xff]  ;;  %v513_v22 = vld [vmem:[%s1095_s5 + $0x78] sm:$0xff]  ;;  %v605_v24 = vld [vmem:[%s1094_s4] ss:$0 sm:$0xff] }
  0x35   :  { %791 = vmatprep.subr.bf16.mxu1 %v882_v0  ;;  %v607_v32 = vld [vmem:[%s1096_s6] ss:$0 sm:$0xff] }
  0x36   :  { %769 = vmatpush3.bf16.msra.mxu0 %v768_v23  ;;  %v810_v23 = vpack.c.bf16 %v513_v22, %v512_v21 }
  0x37   :  { %770 = vmatprep.subr.bf16.mxu0 %v882_v0 }
  0x38   :  { %793 = vmatpush3.bf16.msra.mxu1 %v792_v5 }
  0x39   :  { %794 = vmatprep.subr.bf16.mxu1 %v882_v0 }
  0x3a   :  { %772 = vmatpush3.bf16.msra.mxu0 %v771_v27 }
  0x3b   :  { %773 = vmatprep.subr.bf16.mxu0 %v882_v0 }
  0x3c   :  { %796 = vmatpush3.bf16.msra.mxu1 %v795_v8 }
  0x3d   :  { %797 = vmatprep.subr.bf16.mxu1 %v882_v0 }
  0x3e   :  { %775 = vmatpush3.bf16.msra.mxu0 %v774_v34 }
  0x3f   :  { %776 = vmatprep.subr.bf16.mxu0 %v882_v0 }
  0x40   :  { %799 = vmatpush3.bf16.msra.mxu1 %v798_v11 }
  0x41   :  { %800 = vmatprep.subr.bf16.mxu1 %v882_v0 }
  0x42   :  { %778 = vmatpush3.bf16.msra.mxu0 %v777_v40 }
  0x43   :  { %779 = vmatprep.subr.bf16.mxu0 %v882_v0 }
  0x44   :  { %802 = vmatpush3.bf16.msra.mxu1 %v801_v14 }
  0x45   :  { %803 = vmatprep.subr.bf16.mxu1 %v882_v0 }
  0x46   :  { %781 = vmatpush3.bf16.msra.mxu0 %v780_v43 }
  0x47   :  { %782 = vmatprep.subr.bf16.mxu0 %v882_v0 }
  0x48   :  { %805 = vmatpush3.bf16.msra.mxu1 %v804_v17 }
  0x49   :  { %806 = vmatprep.subr.bf16.mxu1 %v882_v0 }
  0x4a   :  { %784 = vmatpush3.bf16.msra.mxu0 %v783_v46 }
  0x4b   :  { %785 = vmatprep.subr.bf16.mxu0 %v882_v0 }
  0x4c   :  { %808 = vmatpush3.bf16.msra.mxu1 %v807_v20 }
  0x4d   :  { %809 = vmatprep.subr.bf16.mxu1 %v882_v0 }
  0x4e   :  { %787 = vmatpush3.bf16.msra.mxu0 %v786_v49 }
  0x50   :  { %811 = vmatpush3.bf16.msra.mxu1 %v810_v23 }
  0xff   :  { %v128_v26 = vpop.f32.mrb[0].mxu0  ;;  %v206_v28 = vpop.f32.mrb[0].mxu1 }
 0x100   :  { %v660_v29 = vpop.f32.mrb[1].mxu0  ;;  %367 = vrot.lane.b32.xlu0 %v206_v28, %s885_s14  ;;  %v667_v30 = vpop.f32.mrb[1].mxu1 }
 0x103   :  { %v284_v33 = vpop.f32.mrb[2].mxu0  ;;  %v362_v35 = vpop.f32.mrb[2].mxu1 }
 0x104   :  { %v674_v36 = vpop.f32.mrb[3].mxu0  ;;  %371 = vrot.lane.b32.xlu0 %v284_v33, %s886_s19  ;;  %375 = vrot.lane.b32.xlu1 %v362_v35, %s887_s20  ;;  %v681_v37 = vpop.f32.mrb[3].mxu1 }
 0x172   :  { %v368_v50 = vpop.permute.xlu0 %367 }
 0x173   :  { %v379_v51 = vsel %vm378_vm2, %v128_v26, %v368_v50 }
 0x176   :  { %v372_v52 = vpop.permute.xlu0 %371  ;;  %v376_v53 = vpop.permute.xlu1 %375 }
 0x177   :  { %v381_v55 = vsel %vm380_vm3, %v379_v51, %v372_v52 }
 0x178   :  { %v383_v56 = vsel %vm382_vm4, %v381_v55, %v376_v53 }
 0x179   :  { %v390_v57 = vadd.f32 %v603_v54, %v383_v56 }
 0x17b   :  { %v604_v58 = vmul.f32 -1.442695, %v390_v57 }
 0x17d   :  { %822 = vpow2.f32 %v604_v58 }
 0x187   :  { %v823_v59 = vpop.eup %822 }
 0x188   :  { %v394_v60 = vadd.f32 1.0, %v823_v59 }
 0x18a   :  { %824 = vrcp.f32 %v394_v60 }
 0x194   :  { %v825_v61 = vpop.eup %824 }
 0x195   :  { %v397_v62 = vmul.f32 %v825_v61, %v390_v57 }
 0x197   :  { %715 = vmatmul.mubr.f32.vlgmr.msra.gmra.mrb[4].mxu0 %v397_v62 }
 0x26a   :  { %v487_v25 = vpop.f32.mrb[4].mxu0 }
 0x26b   :  { %v488_v26 = vadd.f32 %v605_v24, %v487_v25  ;;  %v716_v27 = vpop.f32.mrb[5].mxu0 }
 0x26d   :  { %v606_v28 = vmul.f32 -1.442695, %v488_v26 }
 0x26f   :  { %826 = vpow2.f32 %v606_v28 }
 0x279   :  { %v827_v0 = vpop.eup %826 }
 0x27a   :  { %v494_v29 = vadd.f32 1.0, %v827_v0 }
 0x27c   :  { %828 = vrcp.f32 %v494_v29 }
 0x286   :  { %v829_v30 = vpop.eup %828 }
 0x287   :  { %v497_v31 = vmul.f32 %v829_v30, %v488_v26 }
 0x289   :  { %750 = vmatmul.mubr.f32.vlgmr.msra.gmra.mrb[4].mxu1 %v497_v31 }
 0x35c   :  { %v587_v33 = vpop.f32.mrb[4].mxu1 }
 0x35d   :  { %v588_v34 = vadd.f32 %v607_v32, %v587_v33  ;;  %v751_v35 = vpop.f32.mrb[5].mxu1 }
 0x35f   :  { %592 = vst.msk [vmem:[%s1097_s7] sm:$0xff] %vm591_vm5, %v588_v34 }
 0x360   :  { %597 = vsyncpa [#allocation3], 1 }
 0x361   :  { %598 = vsyncpa [#allocation5], 1 }

// kernel: tpu_custom_call.1
= control target key start
LH: loop header
LB: loop body
LE: loop exit
PB: predicated region body
PF: predicated region fallthrough
CT: control target
= control target key end

     0   :  { %12 = vsyncpa [#allocation3], 0  ;;  %s1090_s0 = inlined_call_operand.hbm [shape: f32[4,8,16], index: 0, kind: input, shape index: {}]   ;;  %s1091_s1 = inlined_call_operand.hbm [shape: f32[4,16,32], index: 1, kind: input, shape index: {}]   ;;  %s1092_s2 = inlined_call_operand.vmem [shape: f32[1,128], index: 2, kind: input, shape index: {}]   ;;  %s1093_s3 = inlined_call_operand.vmem [shape: f32[128,128], index: 3, kind: input, shape index: {}]   ;;  %s1094_s4 = inlined_call_operand.vmem [shape: f32[1,128], index: 4, kind: input, shape index: {}]   ;;  %s1095_s5 = inlined_call_operand.vmem [shape: f32[128,4], index: 5, kind: input, shape index: {}]   ;;  %s1096_s6 = inlined_call_operand.vmem [shape: f32[1,4], index: 6, kind: input, shape index: {}]   ;;  %s1097_s7 = inlined_call_operand.vmem [shape: f32[8,4], index: 7, kind: output, shape index: {}]  }
   0x1   :  { %13 = vsyncpa [#allocation5], 0  ;;  %s878_s24 = smov [#allocation2]   ;;  %s830_s28 = scalar_lea.hbm %s1090_s0, 512 }
   0x2   :  { %s19_s25 = sshll.u32 %s878_s24, 4  ;;  %p831_p0 = scmp.ne.s32.totalorder %s1090_s0, %s830_s28  ;;  %s20_s25 = int_to_ptr.vmem [resolvable:$true] %s19_s25 }
   0x3   :  { %p834_p1 = scmp.lt.u32.totalorder %s830_s28, %s1090_s0 }
   0x5   :  { %p836_p2 = pnand %p834_p1, %p831_p0 }
   0x7   :  { %839 = shalt.err (!%p836_p2)
}
   0x8   :  { %s840_s10 = scalar_lea.vmem %s20_s25, 512  ;;  %p845_p4 = scmp.lt.s32.totalorder %s20_s25, %s20_s25 }
   0x9   :  { %p841_p3 = scmp.ne.s32.totalorder %s20_s25, %s840_s10  ;;  %p846_p5 = scmp.lt.s32.totalorder %s840_s10, %s840_s10 }
   0xb   :  { %p847_p6 = por %p846_p5, %p845_p4 }
   0xd   :  { %p848_p7 = pnand %p847_p6, %p841_p3 }
   0xf   :  { %851 = shalt.err (!%p848_p7)
}
  0x10   :  { %s879_s11 = smov 128   ;;  %s880_s12 = smov 8  }
  0x11   :  { %25 = dma.hbm_to_vmem [thread:$0]  %s1090_s0, 512, %s20_s25, [#allocation3], %s879_s11, %s879_s11, %s880_s12  }
  0x12   :  { %s881_s15 = smov [#allocation4]   ;;  %s852_s19 = scalar_lea.hbm %s1091_s1, 1024 }
  0x13   :  { %s31_s16 = sshll.u32 %s881_s15, 4  ;;  %p853_p8 = scmp.ne.s32.totalorder %s1091_s1, %s852_s19  ;;  %s32_s16 = int_to_ptr.vmem [resolvable:$true] %s31_s16 }
  0x14   :  { %p856_p9 = scmp.lt.u32.totalorder %s852_s19, %s1091_s1 }
  0x16   :  { %p858_p10 = pnand %p856_p9, %p853_p8 }
  0x18   :  { %861 = shalt.err (!%p858_p10)
}
  0x19   :  { %s862_s24 = scalar_lea.vmem %s32_s16, 1024  ;;  %p867_p12 = scmp.lt.s32.totalorder %s32_s16, %s32_s16 }
  0x1a   :  { %p863_p11 = scmp.ne.s32.totalorder %s32_s16, %s862_s24  ;;  %p868_p13 = scmp.lt.s32.totalorder %s862_s24, %s862_s24 }
  0x1c   :  { %p869_p0 = por %p868_p13, %p867_p12 }
  0x1e   :  { %p870_p1 = pnand %p869_p0, %p863_p11 }
  0x20   :  { %873 = shalt.err (!%p870_p1)
}
  0x21   :  { %37 = dma.hbm_to_vmem [thread:$0]  %s1091_s1, 1024, %s32_s16, [#allocation5], %s879_s11, %s879_s11, %s880_s12  }
  0x22   :  { %874 = dma.done.wait [#allocation3], 512  }
  0x23   :  { %875 = vsyncadd [#allocation3], 4294966784 }
  0x24   :  { %876 = dma.done.wait [#allocation5], 1024  }
  0x25   :  { %877 = vsyncadd [#allocation5], 4294966272  ;;  %v882_v0 = vmov 0.0|0.0   ;;  %vm883_vm0 = vmmov 0   ;;  %v884_v1 = vmov 0.0   ;;  %v56_v2 = vld [vmem:[#allocation4] sm:$0xff] }
  0x26   :  { %752 = vmatprep.subr.bf16.mxu0 %v882_v0  ;;  %755 = vmatprep.subr.bf16.mxu1 %v882_v0  ;;  %v57_v3 = vld [vmem:[#allocation4 + $0x8] sm:$0xff]  ;;  %v135_v4 = vld [vmem:[#allocation4 + $0x10] sm:$0xff]  ;;  %v136_v6 = vld [vmem:[#allocation4 + $0x18] sm:$0xff]  ;;  %vm58_vm1 = vcmask 130048   ;;  %s885_s14 = smov 32   ;;  %s886_s19 = smov 64  }
  0x27   :  { %658 = vmatprep.mubr.msk.f32.mxu0 %vm883_vm0, %v884_v1  ;;  %665 = vmatprep.mubr.msk.f32.mxu1 %vm883_vm0, %v884_v1  ;;  %v753_v5 = vpack.c.bf16 %v57_v3, %v56_v2  ;;  %v756_v7 = vpack.c.bf16 %v136_v6, %v135_v4  ;;  %v213_v8 = vld [vmem:[#allocation4 + $0x20] sm:$0xff]  ;;  %v214_v9 = vld [vmem:[#allocation4 + $0x28] sm:$0xff]  ;;  %v291_v10 = vld [vmem:[#allocation4 + $0x30] sm:$0xff]  ;;  %s887_s20 = smov 96   ;;  %vm378_vm2 = vcmask 261120   ;;  %vm380_vm3 = vcmask 523264  }
  0x28   :  { %v55_v11 = vld [vmem:[#allocation2] sm:$0xff]  ;;  %v759_v12 = vpack.c.bf16 %v214_v9, %v213_v8  ;;  %v292_v13 = vld [vmem:[#allocation4 + $0x38] sm:$0xff]  ;;  %v133_v14 = vld [vmem:[#allocation2 + $0x8] sm:$0xff]  ;;  %vm382_vm4 = vcmask 785408   ;;  %vm591_vm5 = vcmask 31744  }
  0x29   :  { %754 = vmatpush3.bf16.msra.mxu0 %v753_v5  ;;  %757 = vmatpush3.bf16.msra.mxu1 %v756_v7  ;;  %v762_v15 = vpack.c.bf16 %v292_v13, %v291_v10  ;;  %v211_v16 = vld [vmem:[#allocation2 + $0x10] sm:$0xff]  ;;  %v289_v17 = vld [vmem:[#allocation2 + $0x18] sm:$0xff]  ;;  %v398_v18 = vld [vmem:[%s1093_s3] sm:$0xff] }
  0x2a   :  { %758 = vmatprep.subr.bf16.mxu0 %v882_v0  ;;  %761 = vmatprep.subr.bf16.mxu1 %v882_v0  ;;  %v399_v19 = vld [vmem:[%s1093_s3 + $0x8] sm:$0xff]  ;;  %v400_v21 = vld [vmem:[%s1093_s3 + $0x10] sm:$0xff]  ;;  %v401_v22 = vld [vmem:[%s1093_s3 + $0x18] sm:$0xff] }
  0x2b   :  { %v765_v20 = vpack.c.bf16 %v399_v19, %v398_v18  ;;  %v768_v23 = vpack.c.bf16 %v401_v22, %v400_v21  ;;  %v402_v24 = vld [vmem:[%s1093_s3 + $0x20] sm:$0xff]  ;;  %v403_v25 = vld [vmem:[%s1093_s3 + $0x28] sm:$0xff]  ;;  %v404_v31 = vld [vmem:[%s1093_s3 + $0x30] sm:$0xff] }
  0x2c   :  { %659 = vmatmul.mubr.msk.f32.vlgmr.msra.gmra.mrb[0].mxu0 %vm58_vm1, %v55_v11  ;;  %666 = vmatmul.mubr.msk.f32.vlgmr.msra.gmra.mrb[0].mxu1 %vm58_vm1, %v133_v14  ;;  %v771_v27 = vpack.c.bf16 %v403_v25, %v402_v24  ;;  %v405_v32 = vld [vmem:[%s1093_s3 + $0x38] sm:$0xff]  ;;  %v406_v38 = vld [vmem:[%s1093_s3 + $0x40] sm:$0xff]  ;;  %v407_v39 = vld [vmem:[%s1093_s3 + $0x48] sm:$0xff] }
  0x2d   :  { %760 = vmatpush3.bf16.msra.mxu0 %v759_v12  ;;  %763 = vmatpush3.bf16.msra.mxu1 %v762_v15  ;;  %v774_v34 = vpack.c.bf16 %v405_v32, %v404_v31  ;;  %v777_v40 = vpack.c.bf16 %v407_v39, %v406_v38  ;;  %v408_v41 = vld [vmem:[%s1093_s3 + $0x50] sm:$0xff]  ;;  %v409_v42 = vld [vmem:[%s1093_s3 + $0x58] sm:$0xff]  ;;  %v410_v44 = vld [vmem:[%s1093_s3 + $0x60] sm:$0xff] }
  0x2e   :  { %672 = vmatprep.mubr.msk.f32.mxu0 %vm883_vm0, %v884_v1  ;;  %679 = vmatprep.mubr.msk.f32.mxu1 %vm883_vm0, %v884_v1  ;;  %v780_v43 = vpack.c.bf16 %v409_v42, %v408_v41  ;;  %v411_v45 = vld [vmem:[%s1093_s3 + $0x68] sm:$0xff]  ;;  %v412_v47 = vld [vmem:[%s1093_s3 + $0x70] sm:$0xff]  ;;  %v413_v48 = vld [vmem:[%s1093_s3 + $0x78] sm:$0xff] }
  0x2f   :  { %764 = vmatprep.subr.bf16.mxu0 %v882_v0  ;;  %788 = vmatprep.subr.bf16.mxu1 %v882_v0  ;;  %v783_v46 = vpack.c.bf16 %v411_v45, %v410_v44  ;;  %v786_v49 = vpack.c.bf16 %v413_v48, %v412_v47  ;;  %v603_v54 = vld [vmem:[%s1092_s2] ss:$0 sm:$0xff]  ;;  %v500_v3 = vld [vmem:[%s1095_s5 + $0x10] sm:$0xff]  ;;  %v501_v4 = vld [vmem:[%s1095_s5 + $0x18] sm:$0xff] }
  0x30   :  { %673 = vmatmul.mubr.msk.f32.vlgmr.msra.gmra.mrb[2].mxu0 %vm58_vm1, %v211_v16  ;;  %680 = vmatmul.mubr.msk.f32.vlgmr.msra.gmra.mrb[2].mxu1 %vm58_vm1, %v289_v17  ;;  %v498_v63 = vld [vmem:[%s1095_s5] sm:$0xff]  ;;  %v792_v5 = vpack.c.bf16 %v501_v4, %v500_v3  ;;  %v503_v7 = vld [vmem:[%s1095_s5 + $0x28] sm:$0xff]  ;;  %v504_v9 = vld [vmem:[%s1095_s5 + $0x30] sm:$0xff] }
  0x31   :  { %714 = vmatprep.mubr.msk.f32.mxu0 %vm883_vm0, %v884_v1  ;;  %749 = vmatprep.mubr.msk.f32.mxu1 %vm883_vm0, %v884_v1  ;;  %v499_v1 = vld [vmem:[%s1095_s5 + $0x8] sm:$0xff]  ;;  %v502_v6 = vld [vmem:[%s1095_s5 + $0x20] sm:$0xff]  ;;  %v505_v10 = vld [vmem:[%s1095_s5 + $0x38] sm:$0xff] }
  0x32   :  { %766 = vmatpush3.bf16.msra.mxu0 %v765_v20  ;;  %v789_v2 = vpack.c.bf16 %v499_v1, %v498_v63  ;;  %v795_v8 = vpack.c.bf16 %v503_v7, %v502_v6  ;;  %v798_v11 = vpack.c.bf16 %v505_v10, %v504_v9  ;;  %v506_v12 = vld [vmem:[%s1095_s5 + $0x40] sm:$0xff]  ;;  %v507_v13 = vld [vmem:[%s1095_s5 + $0x48] sm:$0xff]  ;;  %v508_v15 = vld [vmem:[%s1095_s5 + $0x50] sm:$0xff] }
  0x33   :  { %767 = vmatprep.subr.bf16.mxu0 %v882_v0  ;;  %v801_v14 = vpack.c.bf16 %v507_v13, %v506_v12  ;;  %v509_v16 = vld [vmem:[%s1095_s5 + $0x58] sm:$0xff]  ;;  %v510_v18 = vld [vmem:[%s1095_s5 + $0x60] sm:$0xff]  ;;  %v511_v19 = vld [vmem:[%s1095_s5 + $0x68] sm:$0xff] }
  0x34   :  { %790 = vmatpush3.bf16.msra.mxu1 %v789_v2  ;;  %v804_v17 = vpack.c.bf16 %v509_v16, %v508_v15  ;;  %v807_v20 = vpack.c.bf16 %v511_v19, %v510_v18  ;;  %v512_v21 = vld [vmem:[%s1095_s5 + $0x70] sm:$0xff]  ;;  %v513_v22 = vld [vmem:[%s1095_s5 + $0x78] sm:$0xff]  ;;  %v605_v24 = vld [vmem:[%s1094_s4] ss:$0 sm:$0xff] }
  0x35   :  { %791 = vmatprep.subr.bf16.mxu1 %v882_v0  ;;  %v607_v32 = vld [vmem:[%s1096_s6] ss:$0 sm:$0xff] }
  0x36   :  { %769 = vmatpush3.bf16.msra.mxu0 %v768_v23  ;;  %v810_v23 = vpack.c.bf16 %v513_v22, %v512_v21 }
  0x37   :  { %770 = vmatprep.subr.bf16.mxu0 %v882_v0 }
  0x38   :  { %793 = vmatpush3.bf16.msra.mxu1 %v792_v5 }
  0x39   :  { %794 = vmatprep.subr.bf16.mxu1 %v882_v0 }
  0x3a   :  { %772 = vmatpush3.bf16.msra.mxu0 %v771_v27 }
  0x3b   :  { %773 = vmatprep.subr.bf16.mxu0 %v882_v0 }
  0x3c   :  { %796 = vmatpush3.bf16.msra.mxu1 %v795_v8 }
  0x3d   :  { %797 = vmatprep.subr.bf16.mxu1 %v882_v0 }
  0x3e   :  { %775 = vmatpush3.bf16.msra.mxu0 %v774_v34 }
  0x3f   :  { %776 = vmatprep.subr.bf16.mxu0 %v882_v0 }
  0x40   :  { %799 = vmatpush3.bf16.msra.mxu1 %v798_v11 }
  0x41   :  { %800 = vmatprep.subr.bf16.mxu1 %v882_v0 }
  0x42   :  { %778 = vmatpush3.bf16.msra.mxu0 %v777_v40 }
  0x43   :  { %779 = vmatprep.subr.bf16.mxu0 %v882_v0 }
  0x44   :  { %802 = vmatpush3.bf16.msra.mxu1 %v801_v14 }
  0x45   :  { %803 = vmatprep.subr.bf16.mxu1 %v882_v0 }
  0x46   :  { %781 = vmatpush3.bf16.msra.mxu0 %v780_v43 }
  0x47   :  { %782 = vmatprep.subr.bf16.mxu0 %v882_v0 }
  0x48   :  { %805 = vmatpush3.bf16.msra.mxu1 %v804_v17 }
  0x49   :  { %806 = vmatprep.subr.bf16.mxu1 %v882_v0 }
  0x4a   :  { %784 = vmatpush3.bf16.msra.mxu0 %v783_v46 }
  0x4b   :  { %785 = vmatprep.subr.bf16.mxu0 %v882_v0 }
  0x4c   :  { %808 = vmatpush3.bf16.msra.mxu1 %v807_v20 }
  0x4d   :  { %809 = vmatprep.subr.bf16.mxu1 %v882_v0 }
  0x4e   :  { %787 = vmatpush3.bf16.msra.mxu0 %v786_v49 }
  0x50   :  { %811 = vmatpush3.bf16.msra.mxu1 %v810_v23 }
  0xff   :  { %v128_v26 = vpop.f32.mrb[0].mxu0  ;;  %v206_v28 = vpop.f32.mrb[0].mxu1 }
 0x100   :  { %v660_v29 = vpop.f32.mrb[1].mxu0  ;;  %367 = vrot.lane.b32.xlu0 %v206_v28, %s885_s14  ;;  %v667_v30 = vpop.f32.mrb[1].mxu1 }
 0x103   :  { %v284_v33 = vpop.f32.mrb[2].mxu0  ;;  %v362_v35 = vpop.f32.mrb[2].mxu1 }
 0x104   :  { %v674_v36 = vpop.f32.mrb[3].mxu0  ;;  %371 = vrot.lane.b32.xlu0 %v284_v33, %s886_s19  ;;  %375 = vrot.lane.b32.xlu1 %v362_v35, %s887_s20  ;;  %v681_v37 = vpop.f32.mrb[3].mxu1 }
 0x172   :  { %v368_v50 = vpop.permute.xlu0 %367 }
 0x173   :  { %v379_v51 = vsel %vm378_vm2, %v128_v26, %v368_v50 }
 0x176   :  { %v372_v52 = vpop.permute.xlu0 %371  ;;  %v376_v53 = vpop.permute.xlu1 %375 }
 0x177   :  { %v381_v55 = vsel %vm380_vm3, %v379_v51, %v372_v52 }
 0x178   :  { %v383_v56 = vsel %vm382_vm4, %v381_v55, %v376_v53 }
 0x179   :  { %v390_v57 = vadd.f32 %v603_v54, %v383_v56 }
 0x17b   :  { %v604_v58 = vmul.f32 -1.442695, %v390_v57 }
 0x17d   :  { %822 = vpow2.f32 %v604_v58 }
 0x187   :  { %v823_v59 = vpop.eup %822 }
 0x188   :  { %v394_v60 = vadd.f32 1.0, %v823_v59 }
 0x18a   :  { %824 = vrcp.f32 %v394_v60 }
 0x194   :  { %v825_v61 = vpop.eup %824 }
 0x195   :  { %v397_v62 = vmul.f32 %v825_v61, %v390_v57 }
 0x197   :  { %715 = vmatmul.mubr.f32.vlgmr.msra.gmra.mrb[4].mxu0 %v397_v62 }
 0x26a   :  { %v487_v25 = vpop.f32.mrb[4].mxu0 }
 0x26b   :  { %v488_v26 = vadd.f32 %v605_v24, %v487_v25  ;;  %v716_v27 = vpop.f32.mrb[5].mxu0 }
 0x26d   :  { %v606_v28 = vmul.f32 -1.442695, %v488_v26 }
 0x26f   :  { %826 = vpow2.f32 %v606_v28 }
 0x279   :  { %v827_v0 = vpop.eup %826 }
 0x27a   :  { %v494_v29 = vadd.f32 1.0, %v827_v0 }
 0x27c   :  { %828 = vrcp.f32 %v494_v29 }
 0x286   :  { %v829_v30 = vpop.eup %828 }
 0x287   :  { %v497_v31 = vmul.f32 %v829_v30, %v488_v26 }
 0x289   :  { %750 = vmatmul.mubr.f32.vlgmr.msra.gmra.mrb[4].mxu1 %v497_v31 }
 0x35c   :  { %v587_v33 = vpop.f32.mrb[4].mxu1 }
 0x35d   :  { %v588_v34 = vadd.f32 %v607_v32, %v587_v33  ;;  %v751_v35 = vpop.f32.mrb[5].mxu1 }
 0x35f   :  { %592 = vst.msk [vmem:[%s1097_s7] sm:$0xff] %vm591_vm5, %v588_v34 }
 0x360   :  { %597 = vsyncpa [#allocation3], 1 }
 0x361   :  { %598 = vsyncpa [#allocation5], 1 }

</bundles_post_ra>
